<compile_context>
chip_gen: v6e
topology: v6e:2x2x1
jax: 0.10.0
libtpu: 0.0.40
codegen_flags: <defaults>
</compile_context>

<pallas_src>
import jax
import jax.numpy as jnp
from jax import lax
from jax.experimental import pallas as pl
from jax.experimental.pallas import tpu as pltpu


# ----------------------------- problem sizes -----------------------------
# PyTorch: DilatedCircConv(state_dim=4, out_state_dim=8, n_adj=4, dilation=1)
B = 2          # batch
CIN = 4        # state_dim
COUT = 8       # out_state_dim
L = 16         # sequence length
N_ADJ = 4
DILATION = 1
K = 2 * N_ADJ + 1            # kernel size = 9
PAD = N_ADJ * DILATION       # circular pad each side = 4


# ------------------- one-time parameter packing (init time) -------------------
def pack_params(weight, bias):
    """Expand Conv1d params into a circulant matmul form.

    weight: (COUT, CIN, K), bias: (COUT,)
    Returns:
      w_circ: (CIN*L, COUT*L) with
              w_circ[c*L + m, o*L + l] = sum_k weight[o, c, k] * [m == (l + k*d - PAD) mod L]
      b_flat: (1, COUT*L) with b_flat[0, o*L + l] = bias[o]
    """
    weight = weight.astype(jnp.float32)
    l_idx = jnp.arange(L)
    k_idx = jnp.arange(K)
    # source position m for output position l and tap k (circular indexing)
    src = (l_idx[None, :] + k_idx[:, None] * DILATION - PAD) % L          # (K, L)
    sel = (src[:, :, None] == jnp.arange(L)[None, None, :]).astype(jnp.float32)  # (K, l, m)
    # w_circ[c, m, o, l] = sum_k weight[o, c, k] * sel[k, l, m]
    w_circ = jnp.einsum("ock,klm->cmol", weight, sel).reshape(CIN * L, COUT * L)
    b_flat = jnp.repeat(bias.astype(jnp.float32), L).reshape(1, COUT * L)
    return w_circ, b_flat


# ------------------------------ fused kernel ------------------------------
def dilated_circ_conv_kernel(x_ref, w_ref, b_ref, o_ref):
    # x_ref : (B, CIN*L)       = (2, 64)   whole batch, resident in VMEM
    # w_ref : (CIN*L, COUT*L)  = (64, 128) circulant weight
    # b_ref : (1, COUT*L)      = (1, 128)  bias, broadcast over batch rows
    # o_ref : (B, COUT*L)      = (2, 128)  lane-dense output slab
    acc = jnp.dot(
        x_ref[...], w_ref[...],
        preferred_element_type=jnp.float32,
        precision=lax.Precision.HIGHEST,
    )
    o_ref[...] = (acc + b_ref[...]).astype(o_ref.dtype)


# --------------------------------- wrapper ---------------------------------
@jax.jit
def dilated_circ_conv_forward(x, w_circ, b_flat):
    # x: (B, CIN, L) f32; w_circ/b_flat are pre-packed once at init time.
    x_flat = x.reshape(B, CIN * L).astype(jnp.float32)   # contiguous reshape: free

    vmem = pltpu.MemorySpace.VMEM
    out_flat = pl.pallas_call(
        dilated_circ_conv_kernel,
        out_shape=jax.ShapeDtypeStruct((B, COUT * L), jnp.float32),
        in_specs=[
            pl.BlockSpec(memory_space=vmem),   # x_flat   (2, 64)
            pl.BlockSpec(memory_space=vmem),   # w_circ   (64, 128)
            pl.BlockSpec(memory_space=vmem),   # b_flat   (1, 128)
        ],
        out_specs=pl.BlockSpec(memory_space=vmem),
    )(x_flat, w_circ, b_flat)

    # (B, COUT*L) -> (B, COUT, L): contiguous reshape (bitcast), no copy kernel.
    return out_flat.reshape(B, COUT, L)


# ------------------------------ pure-JAX reference ------------------------------
def dilated_circ_conv_ref(x, weight, bias):
    xp = jnp.concatenate([x[..., L - PAD:], x, x[..., :PAD]], axis=2)
    y = lax.conv_general_dilated(
        xp, weight, window_strides=(1,), padding="VALID",
        rhs_dilation=(DILATION,),
        dimension_numbers=("NCH", "OIH", "NCH"),
        precision=lax.Precision.HIGHEST,
    )
    return y + bias.reshape(1, COUT, 1)


if __name__ == "__main__":
    key = jax.random.PRNGKey(0)
    kx, kw, kb = jax.random.split(key, 3)

    x = jax.random.normal(kx, (B, CIN, L), dtype=jnp.float32)

    # Deterministic Conv1d-style init: uniform(-1/sqrt(fan_in), 1/sqrt(fan_in))
    fan_in = CIN * K
    bound = 1.0 / jnp.sqrt(jnp.float32(fan_in))
    weight = jax.random.uniform(kw, (COUT, CIN, K), jnp.float32, -bound, bound)
    bias = jax.random.uniform(kb, (COUT,), jnp.float32, -bound, bound)

    # Parameter packing happens ONCE (module init), not per forward call.
    w_circ, b_flat = pack_params(weight, bias)

    out = dilated_circ_conv_forward(x, w_circ, b_flat)
    jax.block_until_ready(out)

    ref = dilated_circ_conv_ref(x, weight, bias)
    assert out.shape == (B, COUT, L)
    assert jnp.max(jnp.abs(out - ref)) < 1e-3, "mismatch vs JAX reference"

    print("KERNEL_OK")
</pallas_src>

<mosaic_0001>
module attributes {stable_mosaic.version = 11 : i64} {
  func.func @dilated_circ_conv_kernel(%arg0: memref<2x64xf32, #tpu.memory_space<vmem>>, %arg1: memref<64x128xf32, #tpu.memory_space<vmem>>, %arg2: memref<1x128xf32, #tpu.memory_space<vmem>>, %arg3: memref<2x128xf32, #tpu.memory_space<vmem>>) attributes {dimension_semantics = [], scalar_prefetch = 0 : i64, scratch_operands = 0 : i64, tpu.core_type = #tpu.core_type<tc>} {
    %c0 = arith.constant 0 : index
    %c0_0 = arith.constant 0 : index
    %0 = vector.load %arg0[%c0, %c0_0] : memref<2x64xf32, #tpu.memory_space<vmem>>, vector<2x64xf32>
    %c0_1 = arith.constant 0 : index
    %c0_2 = arith.constant 0 : index
    %1 = vector.load %arg1[%c0_1, %c0_2] : memref<64x128xf32, #tpu.memory_space<vmem>>, vector<64x128xf32>
    %cst = arith.constant dense<0.000000e+00> : vector<2x128xf32>
    %2 = tpu.matmul %0, %1, %cst {dimension_numbers = #tpu.dot_dimension_numbers<[1], [0], [0], [1], [0, 0, 1, 1], [], []>, precision = #tpu.contract_precision<fp32>} : vector<2x64xf32>, vector<64x128xf32>, vector<2x128xf32> -> vector<2x128xf32>
    %c0_3 = arith.constant 0 : index
    %c0_4 = arith.constant 0 : index
    %3 = vector.load %arg2[%c0_3, %c0_4] : memref<1x128xf32, #tpu.memory_space<vmem>>, vector<1x128xf32>
    %4 = vector.broadcast %3 : vector<1x128xf32> to vector<2x128xf32>
    %5 = arith.addf %2, %4 : vector<2x128xf32>
    %c0_5 = arith.constant 0 : index
    %c0_6 = arith.constant 0 : index
    %6 = vector.load %arg3[%c0_5, %c0_6] : memref<2x128xf32, #tpu.memory_space<vmem>>, vector<2x128xf32>
    tpu.vector_store %arg3[%c0_5, %c0_6], %5 {strides = array<i32>} : memref<2x128xf32, #tpu.memory_space<vmem>>, vector<2x128xf32>,
    return
  }
}

</mosaic_0001>

<bundles_post_ra>
// kernel: dilated_circ_conv_forward.1
= control target key start
LH: loop header
LB: loop body
LE: loop exit
PB: predicated region body
PF: predicated region fallthrough
CT: control target
= control target key end

     0   :  { %8 = vsyncpa [#allocation3], 0  ;;  %s787_s12 = smov [#allocation2]   ;;  %s1020_s0 = inlined_call_operand.vmem [shape: f32[2,64], index: 0, kind: input, shape index: {}]   ;;  %s1021_s1 = inlined_call_operand.hbm [shape: f32[64,128], index: 1, kind: input, shape index: {}]   ;;  %s1022_s2 = inlined_call_operand.vmem [shape: f32[1,128], index: 2, kind: input, shape index: {}]   ;;  %s1023_s3 = inlined_call_operand.vmem [shape: f32[2,128], index: 3, kind: output, shape index: {}]  }
   0x1   :  { %s16_s13 = sshll.u32 %s787_s12, 4  ;;  %s17_s13 = int_to_ptr.vmem [resolvable:$true] %s16_s13 }
   0x2   :  { %s773_s14 = scalar_lea.vmem %s17_s13, 1024  ;;  %p778_p1 = scmp.lt.s32.totalorder %s17_s13, %s17_s13 }
   0x3   :  { %p774_p0 = scmp.ne.s32.totalorder %s17_s13, %s773_s14  ;;  %p779_p2 = scmp.lt.s32.totalorder %s773_s14, %s773_s14 }
   0x5   :  { %p780_p3 = por %p779_p2, %p778_p1 }
   0x7   :  { %p781_p4 = pnand %p780_p3, %p774_p0 }
   0x9   :  { %784 = shalt.err (!%p781_p4)
}
   0xa   :  { %s788_s15 = smov 128   ;;  %s789_s16 = smov 8  }
   0xb   :  { %22 = dma.hbm_to_vmem [thread:$0]  %s1021_s1, 1024, %s17_s13, [#allocation3], %s788_s15, %s788_s15, %s789_s16  }
   0xc   :  { %785 = dma.done.wait [#allocation3], 1024  }
   0xd   :  { %786 = vsyncadd [#allocation3], 4294966272  ;;  %v790_v0 = vmov 0.0   ;;  %vm791_vm0 = vmmov 0   ;;  %v36_v1 = vld [vmem:[#allocation2 + $0x38] sm:$0xff]  ;;  %v35_v2 = vld [vmem:[#allocation2 + $0x30] sm:$0xff] }
   0xe   :  { %646 = vmatprep.subr.mxu0 %v790_v0  ;;  %665 = vmatprep.subr.mxu1 %v790_v0  ;;  %v34_v3 = vld [vmem:[#allocation2 + $0x28] sm:$0xff]  ;;  %vm44_vm1 = vcmask 523264   ;;  %v821_v4 = vand.u32 4294901760, %v36_v1  ;;  %v823_v5 = vand.u32 4294901760, %v35_v2  ;;  %v33_v7 = vld [vmem:[#allocation2 + $0x20] sm:$0xff]  ;;  %v32_v8 = vld [vmem:[#allocation2 + $0x18] sm:$0xff] }
   0xf   :  { %662 = vmatprep.mubr.msk.f32.mxu0 %vm791_vm0, %v790_v0  ;;  %681 = vmatprep.mubr.msk.f32.mxu1 %vm791_vm0, %v790_v0  ;;  %v825_v6 = vand.u32 4294901760, %v34_v3  ;;  %v31_v9 = vld [vmem:[#allocation2 + $0x10] sm:$0xff]  ;;  %v827_v10 = vand.u32 4294901760, %v33_v7  ;;  %v829_v11 = vand.u32 4294901760, %v32_v8  ;;  %v30_v13 = vld [vmem:[#allocation2 + $0x8] sm:$0xff]  ;;  %v29_v14 = vld [vmem:[#allocation2] sm:$0xff] }
  0x10   :  { %v831_v12 = vand.u32 4294901760, %v31_v9  ;;  %647 = vmatpush3.msra.mxu0 %v821_v4  ;;  %v835_v15 = vsub.f32 %v36_v1, %v821_v4  ;;  %v838_v16 = vsub.f32 %v35_v2, %v823_v5  ;;  %v840_v17 = vand.u32 4294901760, %v30_v13  ;;  %v28_v19 = vld [vmem:[%s1020_s0] sm:$0x3] }
  0x11   :  { %v843_v18 = vsub.f32 %v34_v3, %v825_v6  ;;  %648 = vmatprep.subr.mxu0 %v790_v0  ;;  %v849_v20 = vand.u32 4294901760, %v29_v14  ;;  %v852_v21 = vsub.f32 %v33_v7, %v827_v10  ;;  %v46_v22 = vsel %vm44_vm1, %v28_v19, 0  ;;  %v591_v1 = vld [vmem:[%s1022_s2] ss:$0 sm:$0xff] }
  0x12   :  { %v856_v23 = vsub.f32 %v32_v8, %v829_v11  ;;  %649 = vmatpush3.msra.mxu0 %v823_v5  ;;  %v150_v24 = vand.u32 4294901760, %v835_v15  ;;  %v157_v25 = vand.u32 4294901760, %v838_v16  ;;  %v862_v27 = vand.u32 4294901760, %v46_v22 }
  0x13   :  { %v164_v26 = vand.u32 4294901760, %v843_v18  ;;  %650 = vmatprep.subr.mxu0 %v790_v0  ;;  %v171_v28 = vand.u32 4294901760, %v852_v21  ;;  %v868_v30 = vsub.f32 %v31_v9, %v831_v12  ;;  %v871_v31 = vsub.f32 %v30_v13, %v840_v17 }
  0x14   :  { %v178_v29 = vand.u32 4294901760, %v856_v23  ;;  %651 = vmatpush3.msra.mxu0 %v825_v6  ;;  %v151_v32 = vsub.f32 %v835_v15, %v150_v24  ;;  %v158_v33 = vsub.f32 %v838_v16, %v157_v25  ;;  %v884_v35 = vsub.f32 %v46_v22, %v862_v27 }
  0x15   :  { %v165_v34 = vsub.f32 %v843_v18, %v164_v26  ;;  %652 = vmatprep.subr.mxu0 %v790_v0  ;;  %v172_v36 = vsub.f32 %v852_v21, %v171_v28  ;;  %v185_v40 = vand.u32 4294901760, %v868_v30  ;;  %v192_v44 = vand.u32 4294901760, %v871_v31 }
  0x16   :  { %653 = vmatpush3.msra.mxu0 %v827_v10  ;;  %v152_v37 = vand.u32 4294901760, %v151_v32  ;;  %v159_v38 = vand.u32 4294901760, %v158_v33  ;;  %v123_v39 = vand.u32 4294901760, %v884_v35  ;;  %v179_v41 = vsub.f32 %v856_v23, %v178_v29 }
  0x17   :  { %654 = vmatprep.subr.mxu0 %v790_v0  ;;  %v166_v42 = vand.u32 4294901760, %v165_v34  ;;  %v903_v45 = vsub.f32 %v29_v14, %v849_v20  ;;  %v173_v46 = vand.u32 4294901760, %v172_v36  ;;  %v186_v47 = vsub.f32 %v868_v30, %v185_v40 }
  0x18   :  { %655 = vmatpush3.msra.mxu0 %v829_v11  ;;  %666 = vmatpush3.msra.mxu1 %v152_v37  ;;  %v124_v43 = vsub.f32 %v884_v35, %v123_v39  ;;  %v180_v50 = vand.u32 4294901760, %v179_v41  ;;  %v193_v51 = vsub.f32 %v871_v31, %v192_v44 }
  0x19   :  { %656 = vmatprep.subr.mxu0 %v790_v0  ;;  %667 = vmatprep.subr.mxu1 %v790_v0  ;;  %v199_v48 = vand.u32 4294901760, %v903_v45  ;;  %v187_v52 = vand.u32 4294901760, %v186_v47 }
  0x1a   :  { %657 = vmatpush3.msra.mxu0 %v831_v12  ;;  %668 = vmatpush3.msra.mxu1 %v159_v38  ;;  %v125_v49 = vand.u32 4294901760, %v124_v43  ;;  %v194_v54 = vand.u32 4294901760, %v193_v51 }
  0x1b   :  { %658 = vmatprep.subr.mxu0 %v790_v0  ;;  %669 = vmatprep.subr.mxu1 %v790_v0  ;;  %v200_v53 = vsub.f32 %v903_v45, %v199_v48 }
  0x1c   :  { %659 = vmatpush3.msra.mxu0 %v840_v17  ;;  %670 = vmatpush3.msra.mxu1 %v166_v42 }
  0x1d   :  { %660 = vmatprep.subr.mxu0 %v790_v0  ;;  %671 = vmatprep.subr.mxu1 %v790_v0  ;;  %v201_v55 = vand.u32 4294901760, %v200_v53 }
  0x1e   :  { %661 = vmatpush3.msra.mxu0 %v849_v20  ;;  %672 = vmatpush3.msra.mxu1 %v173_v46 }
  0x1f   :  { %673 = vmatprep.subr.mxu1 %v790_v0  ;;  %684 = vmatprep.subr.mxu0 %v790_v0 }
  0x20   :  { %663 = vmatmul.mubr.f32.vlgmr.msra.gmra.mxu0 %v125_v49  ;;  %674 = vmatpush3.msra.mxu1 %v180_v50 }
  0x21   :  { %685 = vmatpush3.msra.mxu0 %v835_v15  ;;  %675 = vmatprep.subr.mxu1 %v790_v0 }
  0x22   :  { %686 = vmatprep.subr.mxu0 %v790_v0  ;;  %676 = vmatpush3.msra.mxu1 %v187_v52 }
  0x23   :  { %687 = vmatpush3.msra.mxu0 %v838_v16  ;;  %677 = vmatprep.subr.mxu1 %v790_v0 }
  0x24   :  { %688 = vmatprep.subr.mxu0 %v790_v0  ;;  %678 = vmatpush3.msra.mxu1 %v194_v54 }
  0x25   :  { %689 = vmatpush3.msra.mxu0 %v843_v18  ;;  %679 = vmatprep.subr.mxu1 %v790_v0 }
  0x26   :  { %690 = vmatprep.subr.mxu0 %v790_v0  ;;  %680 = vmatpush3.msra.mxu1 %v201_v55 }
  0x27   :  { %691 = vmatpush3.msra.mxu0 %v852_v21  ;;  %682 = vmatmul.mubr.f32.vlgmr.msra.gmra.mxu1 %v862_v27 }
  0x28   :  { %692 = vmatprep.subr.mxu0 %v790_v0  ;;  %703 = vmatprep.subr.mxu1 %v790_v0 }
  0x29   :  { %693 = vmatpush3.msra.mxu0 %v856_v23  ;;  %704 = vmatpush3.msra.mxu1 %v821_v4 }
  0x2a   :  { %694 = vmatprep.subr.mxu0 %v790_v0  ;;  %705 = vmatprep.subr.mxu1 %v790_v0 }
  0x2b   :  { %695 = vmatpush3.msra.mxu0 %v868_v30  ;;  %706 = vmatpush3.msra.mxu1 %v823_v5 }
  0x2c   :  { %696 = vmatprep.subr.mxu0 %v790_v0  ;;  %707 = vmatprep.subr.mxu1 %v790_v0 }
  0x2d   :  { %697 = vmatpush3.msra.mxu0 %v871_v31  ;;  %708 = vmatpush3.msra.mxu1 %v825_v6 }
  0x2e   :  { %698 = vmatprep.subr.mxu0 %v790_v0  ;;  %709 = vmatprep.subr.mxu1 %v790_v0 }
  0x2f   :  { %699 = vmatpush3.msra.mxu0 %v903_v45  ;;  %700 = vmatprep.mubr.msk.f32.mxu0 %vm791_vm0, %v790_v0 }
  0x30   :  { %710 = vmatpush3.msra.mxu1 %v827_v10  ;;  %701 = vmatmul.mubr.f32.vlgmr.msra.gmra.mxu0 %v884_v35 }
  0x31   :  { %711 = vmatprep.subr.mxu1 %v790_v0  ;;  %722 = vmatprep.subr.mxu0 %v790_v0 }
  0x32   :  { %712 = vmatpush3.msra.mxu1 %v829_v11  ;;  %723 = vmatpush3.msra.mxu0 %v150_v24 }
  0x33   :  { %713 = vmatprep.subr.mxu1 %v790_v0  ;;  %724 = vmatprep.subr.mxu0 %v790_v0 }
  0x34   :  { %714 = vmatpush3.msra.mxu1 %v831_v12  ;;  %725 = vmatpush3.msra.mxu0 %v157_v25 }
  0x35   :  { %715 = vmatprep.subr.mxu1 %v790_v0  ;;  %726 = vmatprep.subr.mxu0 %v790_v0 }
  0x36   :  { %716 = vmatpush3.msra.mxu1 %v840_v17  ;;  %727 = vmatpush3.msra.mxu0 %v164_v26 }
  0x37   :  { %717 = vmatprep.subr.mxu1 %v790_v0  ;;  %728 = vmatprep.subr.mxu0 %v790_v0 }
  0x38   :  { %718 = vmatpush3.msra.mxu1 %v849_v20  ;;  %719 = vmatprep.mubr.msk.f32.mxu1 %vm791_vm0, %v790_v0 }
  0x39   :  { %729 = vmatpush3.msra.mxu0 %v171_v28  ;;  %720 = vmatmul.mubr.f32.vlgmr.msra.gmra.mxu1 %v123_v39 }
  0x3a   :  { %730 = vmatprep.subr.mxu0 %v790_v0  ;;  %741 = vmatprep.subr.mxu1 %v790_v0 }
  0x3b   :  { %731 = vmatpush3.msra.mxu0 %v178_v29  ;;  %742 = vmatpush3.msra.mxu1 %v821_v4 }
  0x3c   :  { %732 = vmatprep.subr.mxu0 %v790_v0  ;;  %743 = vmatprep.subr.mxu1 %v790_v0 }
  0x3d   :  { %733 = vmatpush3.msra.mxu0 %v185_v40  ;;  %744 = vmatpush3.msra.mxu1 %v823_v5 }
  0x3e   :  { %734 = vmatprep.subr.mxu0 %v790_v0  ;;  %745 = vmatprep.subr.mxu1 %v790_v0 }
  0x3f   :  { %735 = vmatpush3.msra.mxu0 %v192_v44  ;;  %746 = vmatpush3.msra.mxu1 %v825_v6 }
  0x40   :  { %736 = vmatprep.subr.mxu0 %v790_v0  ;;  %747 = vmatprep.subr.mxu1 %v790_v0 }
  0x41   :  { %737 = vmatpush3.msra.mxu0 %v199_v48  ;;  %738 = vmatprep.mubr.msk.f32.mxu0 %vm791_vm0, %v790_v0 }
  0x42   :  { %748 = vmatpush3.msra.mxu1 %v827_v10  ;;  %739 = vmatmul.mubr.f32.vlgmr.msra.gmra.mxu0 %v862_v27 }
  0x43   :  { %749 = vmatprep.subr.mxu1 %v790_v0  ;;  %757 = vmatprep.mubr.msk.f32.mxu1 %vm791_vm0, %v790_v0 }
  0x44   :  { %750 = vmatpush3.msra.mxu1 %v829_v11 }
  0x45   :  { %751 = vmatprep.subr.mxu1 %v790_v0 }
  0x46   :  { %752 = vmatpush3.msra.mxu1 %v831_v12 }
  0x47   :  { %753 = vmatprep.subr.mxu1 %v790_v0 }
  0x48   :  { %754 = vmatpush3.msra.mxu1 %v840_v17 }
  0x49   :  { %755 = vmatprep.subr.mxu1 %v790_v0 }
  0x4a   :  { %756 = vmatpush3.msra.mxu1 %v849_v20 }
  0x4b   :  { %758 = vmatmul.mubr.f32.vlgmr.msra.gmra.mxu1 %v862_v27 }
  0xe0   :  { %v127_v56 = vpop.f32.mrf.mxu0 }
  0xe1   :  { %v128_v2 = vadd.f32 %v591_v1, %v127_v56 }
  0xe2   :  { %v664_v57 = vpop.f32.mrf.mxu0 }
  0xe7   :  { %v238_v58 = vpop.f32.mrf.mxu1 }
  0xe8   :  { %v239_v4 = vadd.f32 %v238_v58, %v128_v2 }
  0xe9   :  { %v683_v59 = vpop.f32.mrf.mxu1 }
  0xf0   :  { %v326_v60 = vpop.f32.mrf.mxu0 }
  0xf1   :  { %v327_v5 = vadd.f32 %v326_v60, %v239_v4 }
  0xf2   :  { %v702_v61 = vpop.f32.mrf.mxu0 }
  0xf9   :  { %v407_v62 = vpop.f32.mrf.mxu1 }
  0xfa   :  { %v408_v6 = vadd.f32 %v407_v62, %v327_v5 }
  0xfb   :  { %v721_v63 = vpop.f32.mrf.mxu1 }
 0x102   :  { %v502_v3 = vpop.f32.mrf.mxu0 }
 0x103   :  { %v503_v7 = vadd.f32 %v502_v3, %v408_v6 }
 0x104   :  { %v740_v0 = vpop.f32.mrf.mxu0 }
 0x10b   :  { %v581_v8 = vpop.f32.mrf.mxu1 }
 0x10c   :  { %v582_v9 = vadd.f32 %v581_v8, %v503_v7 }
 0x10d   :  { %v759_v10 = vpop.f32.mrf.mxu1 }
 0x10e   :  { %585 = vst [vmem:[%s1023_s3] sm:$0x3] %v582_v9 }
 0x10f   :  { %590 = vsyncpa [#allocation3], 1 }

</bundles_post_ra>
